<compile_context>
chip_gen: v5e
topology: v5e:2x2
jax: 0.10.0
libtpu: 0.0.40
codegen_flags: <defaults>
</compile_context>

<pallas_src>
import numpy as np
import jax
import jax.numpy as jnp
from jax import lax
from jax.experimental import pallas as pl
from jax.experimental.pallas import tpu as pltpu


def _round_up(x: int, m: int) -> int:
    return (x + m - 1) // m * m


def _linear_kernel(x_ref, w_ref, o_ref, acc_ref):
    """One (tm, tn) output tile, accumulated over the K grid axis.

    x_ref:   [tm, tk]  activation tile
    w_ref:   [tn, tk]  weight tile in PyTorch layout (out, in)
    o_ref:   [tm, tn]  output tile
    acc_ref: [tm, tn]  f32 accumulator scratch (persists across K steps)
    """
    k = pl.program_id(2)

    @pl.when(k == 0)
    def _():
        acc_ref[...] = jnp.zeros_like(acc_ref)

    # Contract x's last dim with w's last dim -> x @ w.T on the MXU, f32 acc.
    acc_ref[...] += lax.dot_general(
        x_ref[...],
        w_ref[...],
        dimension_numbers=(((1,), (1,)), ((), ())),
        preferred_element_type=jnp.float32,
    )

    @pl.when(k == pl.num_programs(2) - 1)
    def _():
        o_ref[...] = acc_ref[...].astype(o_ref.dtype)


def _linear_2d(x, weight, tm, tn, tk):
    batch, input_dim = x.shape
    out_dim, in_dim_w = weight.shape
    assert in_dim_w == input_dim

    # Pad to hardware-friendly multiples (zero padding preserves the matmul
    # result exactly): M -> sublane multiple, N/K -> lane multiples so output
    # stores are lane-dense (no masked vst.msk).
    pm = _round_up(batch, 8)
    pn = _round_up(out_dim, 128)
    pk = _round_up(input_dim, 128)

    # Clamp tiles to the (padded) problem, then make padded dims tile-exact.
    tm = min(tm, pm)
    tn = min(tn, pn)
    tk = min(tk, pk)
    pm = _round_up(pm, tm)
    pn = _round_up(pn, tn)
    pk = _round_up(pk, tk)

    xp = x
    if (pm, pk) != (batch, input_dim):
        xp = jnp.zeros((pm, pk), x.dtype).at[:batch, :input_dim].set(x)
    wp = weight
    if (pn, pk) != (out_dim, input_dim):
        wp = jnp.zeros((pn, pk), weight.dtype).at[:out_dim, :input_dim].set(weight)

    grid = (pm // tm, pn // tn, pk // tk)

    cost = pl.CostEstimate(
        flops=2 * pm * pn * pk,
        transcendentals=0,
        bytes_accessed=(pm * pk + pn * pk + pm * pn) * 4,
    )

    out_padded = pl.pallas_call(
        _linear_kernel,
        out_shape=jax.ShapeDtypeStruct((pm, pn), jnp.float32),
        grid=grid,
        in_specs=[
            pl.BlockSpec((tm, tk), lambda i, j, k: (i, k)),  # activations
            pl.BlockSpec((tn, tk), lambda i, j, k: (j, k)),  # weight (out, in)
        ],
        out_specs=pl.BlockSpec((tm, tn), lambda i, j, k: (i, j)),
        scratch_shapes=[pltpu.VMEM((tm, tn), jnp.float32)],
        compiler_params=pltpu.CompilerParams(
            dimension_semantics=("parallel", "parallel", "arbitrary"),
        ),
        cost_estimate=cost,
    )(xp, wp)

    if (pm, pn) != (batch, out_dim):
        return out_padded[:batch, :out_dim]
    return out_padded


def custom_linear_et_forward(x, weight, *, tm=256, tn=256, tk=512):
    """Forward of CustomLinearET: x @ weight.T (no bias).

    x:      [..., input_dim]      float32 (any number of leading batch dims)
    weight: [out_dim, input_dim]  float32 (PyTorch nn.Linear convention)
    returns [..., out_dim]        float32
    """
    input_dim = x.shape[-1]
    out_dim = weight.shape[0]
    lead = x.shape[:-1]

    x2 = x.reshape((-1, input_dim)) if x.ndim != 2 else x
    out2 = _linear_2d(x2, weight, tm, tn, tk)
    if x.ndim != 2:
        return out2.reshape(lead + (out_dim,))
    return out2


def orthogonal_init(key, shape, gain):
    """Deterministic orthogonal init matching torch.nn.init.orthogonal_ semantics."""
    out_dim, in_dim = shape
    flat = jax.random.normal(key, (out_dim, in_dim), dtype=jnp.float32)
    if out_dim < in_dim:
        flat = flat.T
    q, r = jnp.linalg.qr(flat)
    # Sign fix to make the decomposition unique (like PyTorch).
    d = jnp.sign(jnp.diag(r))
    q = q * d[None, :]
    if out_dim < in_dim:
        q = q.T
    return gain * q.astype(jnp.float32)


if __name__ == "__main__":
    key = jax.random.PRNGKey(0)
    k_w, k_x = jax.random.split(key)

    # Small shapes consistent with the module (these get padded to one
    # lane-dense tile inside the wrapper; larger shapes tile/pipeline).
    batch = 8
    input_dim = 32
    out_dim = 16

    # "ortogonal" init path of layer_init() with std=sqrt(2), bias-free.
    weight = orthogonal_init(k_w, (out_dim, input_dim), gain=float(np.sqrt(2.0)))
    x = jax.random.normal(k_x, (batch, input_dim), dtype=jnp.float32)

    out = custom_linear_et_forward(x, weight)
    out = jax.block_until_ready(out)

    # Reference check against plain JAX.
    ref = x @ weight.T
    np.testing.assert_allclose(np.asarray(out), np.asarray(ref), rtol=1e-5, atol=1e-5)

    # Larger, multi-tile shape exercising the K-accumulation and M/N tiling.
    k1, k2 = jax.random.split(k_x)
    xb = jax.random.normal(k1, (512, 1024), dtype=jnp.float32)
    wb = jax.random.normal(k2, (384, 1024), dtype=jnp.float32) * 0.02
    outb = jax.block_until_ready(custom_linear_et_forward(xb, wb))
    refb = xb @ wb.T
    np.testing.assert_allclose(np.asarray(outb), np.asarray(refb), rtol=2e-4, atol=2e-4)

    # 3-D (rollout-style) input through the flattening path.
    k3, k4 = jax.random.split(k1)
    x3 = jax.random.normal(k3, (4, 8, input_dim), dtype=jnp.float32)
    out3 = jax.block_until_ready(custom_linear_et_forward(x3, weight))
    ref3 = x3 @ weight.T
    np.testing.assert_allclose(np.asarray(out3), np.asarray(ref3), rtol=1e-5, atol=1e-5)

    # TODO(synk): eligibility-trace updates (backward/backward_weights/set_weights)
    # are training-time optimizer-state mutation, not part of forward(), so they
    # are not implemented here.

    print("KERNEL_OK")
</pallas_src>

<mosaic_0001>
module attributes {stable_mosaic.version = 11 : i64} {
  func.func @_linear_kernel(%arg0: i32, %arg1: i32, %arg2: i32, %arg3: memref<8x128xf32, #tpu.memory_space<vmem>>, %arg4: memref<128x128xf32, #tpu.memory_space<vmem>>, %arg5: memref<8x128xf32, #tpu.memory_space<vmem>>, %arg6: memref<8x128xf32, #tpu.memory_space<vmem>>) attributes {dimension_semantics = [#tpu.dimension_semantics<parallel>, #tpu.dimension_semantics<parallel>, #tpu.dimension_semantics<arbitrary>], iteration_bounds = array<i64: 1, 1, 1>, scalar_prefetch = 0 : i64, scratch_operands = 1 : i64, tpu.core_type = #tpu.core_type<tc>, window_params = [{transform_indices = @transform_0, window_bounds = array<i64: 8, 128>}, {transform_indices = @transform_1, window_bounds = array<i64: 128, 128>}, {transform_indices = @transform_2, window_bounds = array<i64: 8, 128>}]} {
    %c0_i32 = arith.constant 0 : i32
    %0 = arith.cmpi eq, %arg2, %c0_i32 : i32
    %1 = arith.extui %0 : i1 to i32
    %c0_i32_0 = arith.constant 0 : i32
    %2 = arith.cmpi ne, %1, %c0_i32_0 : i32
    scf.if %2 {
      %cst_10 = arith.constant 0.000000e+00 : f32
      %12 = vector.broadcast %cst_10 : f32 to vector<8x128xf32>
      %c0_11 = arith.constant 0 : index
      %c0_12 = arith.constant 0 : index
      %13 = vector.load %arg6[%c0_11, %c0_12] : memref<8x128xf32, #tpu.memory_space<vmem>>, vector<8x128xf32>
      tpu.vector_store %arg6[%c0_11, %c0_12], %12 {strides = array<i32>} : memref<8x128xf32, #tpu.memory_space<vmem>>, vector<8x128xf32>,
    } else {
    }
    %c0 = arith.constant 0 : index
    %c0_1 = arith.constant 0 : index
    %3 = vector.load %arg6[%c0, %c0_1] : memref<8x128xf32, #tpu.memory_space<vmem>>, vector<8x128xf32>
    %c0_2 = arith.constant 0 : index
    %c0_3 = arith.constant 0 : index
    %4 = vector.load %arg3[%c0_2, %c0_3] : memref<8x128xf32, #tpu.memory_space<vmem>>, vector<8x128xf32>
    %c0_4 = arith.constant 0 : index
    %c0_5 = arith.constant 0 : index
    %5 = vector.load %arg4[%c0_4, %c0_5] : memref<128x128xf32, #tpu.memory_space<vmem>>, vector<128x128xf32>
    %cst = arith.constant dense<0.000000e+00> : vector<8x128xf32>
    %6 = tpu.matmul %4, %5, %cst {dimension_numbers = #tpu.dot_dimension_numbers<[1], [1], [0], [0], [0, 0, 1, 0], [], []>} : vector<8x128xf32>, vector<128x128xf32>, vector<8x128xf32> -> vector<8x128xf32>
    %7 = arith.addf %3, %6 : vector<8x128xf32>
    %c0_6 = arith.constant 0 : index
    %c0_7 = arith.constant 0 : index
    %8 = vector.load %arg6[%c0_6, %c0_7] : memref<8x128xf32, #tpu.memory_space<vmem>>, vector<8x128xf32>
    tpu.vector_store %arg6[%c0_6, %c0_7], %7 {strides = array<i32>} : memref<8x128xf32, #tpu.memory_space<vmem>>, vector<8x128xf32>,
    %c0_i32_8 = arith.constant 0 : i32
    %9 = arith.cmpi eq, %arg2, %c0_i32_8 : i32
    %10 = arith.extui %9 : i1 to i32
    %c0_i32_9 = arith.constant 0 : i32
    %11 = arith.cmpi ne, %10, %c0_i32_9 : i32
    scf.if %11 {
      %c0_10 = arith.constant 0 : index
      %c0_11 = arith.constant 0 : index
      %12 = vector.load %arg6[%c0_10, %c0_11] : memref<8x128xf32, #tpu.memory_space<vmem>>, vector<8x128xf32>
      %c0_12 = arith.constant 0 : index
      %c0_13 = arith.constant 0 : index
      %13 = vector.load %arg5[%c0_12, %c0_13] : memref<8x128xf32, #tpu.memory_space<vmem>>, vector<8x128xf32>
      tpu.vector_store %arg5[%c0_12, %c0_13], %12 {strides = array<i32>} : memref<8x128xf32, #tpu.memory_space<vmem>>, vector<8x128xf32>,
    } else {
    }
    return
  }
  func.func @transform_0(%arg0: i32, %arg1: i32, %arg2: i32) -> (i32, i32) {
    %c0_i32 = arith.constant 0 : i32
    return %arg0, %arg2 : i32, i32
  }
  func.func @transform_1(%arg0: i32, %arg1: i32, %arg2: i32) -> (i32, i32) {
    %c0_i32 = arith.constant 0 : i32
    return %arg1, %arg2 : i32, i32
  }
  func.func @transform_2(%arg0: i32, %arg1: i32, %arg2: i32) -> (i32, i32) {
    %c0_i32 = arith.constant 0 : i32
    return %arg0, %arg1 : i32, i32
  }
}

</mosaic_0001>

<bundles_post_ra>
// kernel: tpu_custom_call.1
= control target key start
LH: loop header
LB: loop body
LE: loop exit
PB: predicated region body
PF: predicated region fallthrough
CT: control target
= control target key end

     0   :  { %7 = vsyncpa [#allocation4], 0  ;;  %s222_s0 = inlined_call_operand.hbm [shape: f32[8,128], index: 0, kind: input, shape index: {}]   ;;  %s223_s1 = inlined_call_operand.hbm [shape: f32[128,128], index: 1, kind: input, shape index: {}]   ;;  %s224_s2 = inlined_call_operand.hbm [shape: f32[8,128], index: 2, kind: output, shape index: {}]  }
   0x1   :  { %8 = vsyncpa [#allocation7], 0 }
   0x2   :  { %9 = vsyncpa [#allocation5], 0  ;;  %s15_s11 = sshll.u32 %s222_s0, 4  ;;  %s193_s12 = smov [#allocation3]   ;;  %s16_s11 = int_to_ptr.hbm [resolvable:$true] %s15_s11 }
   0x3   :  { %s17_s13 = sshll.u32 %s193_s12, 4  ;;  %s25_s16 = sshll.u32 %s223_s1, 4  ;;  %s18_s13 = int_to_ptr.vmem [resolvable:$true] %s17_s13  ;;  %s26_s16 = int_to_ptr.hbm [resolvable:$true] %s25_s16 }
   0x4   :  { %20 = dma.hbm_to_vmem [thread:$0]  %s16_s11, 128, %s18_s13, [#allocation4]  }
   0x5   :  { %s194_s17 = smov [#allocation6]   ;;  %s195_s19 = smov 128  }
   0x6   :  { %s27_s18 = sshll.u32 %s194_s17, 4  ;;  %s196_s20 = smov 8   ;;  %s28_s18 = int_to_ptr.vmem [resolvable:$true] %s27_s18 }
   0x7   :  { %33 = dma.hbm_to_vmem [thread:$0]  %s26_s16, 2048, %s28_s18, [#allocation7], %s195_s19, %s195_s19, %s196_s20  }
   0x8   :  { %187 = dma.done.wait [#allocation4], 128  }
   0x9   :  { %188 = vsyncadd [#allocation4], 4294967168 }
   0xa   :  { %189 = dma.done.wait [#allocation7], 2048  }
   0xb   :  { %190 = vsyncadd [#allocation7], 4294965248  ;;  %v64_v0 = vld [vmem:[#allocation6 + $0x78] sm:$0xff]  ;;  %v63_v1 = vld [vmem:[#allocation6 + $0x70] sm:$0xff]  ;;  %s197_s0 = smov [#allocation8]   ;;  %s99_s23 = sshll.u32 %s224_s2, 4  ;;  %s100_s23 = int_to_ptr.hbm [resolvable:$true] %s99_s23 }
   0xc   :  { %65 = vmatpush.xpose.msra.mxu0 %v64_v0  ;;  %v62_v2 = vld [vmem:[#allocation6 + $0x68] sm:$0xff]  ;;  %v61_v3 = vld [vmem:[#allocation6 + $0x60] sm:$0xff]  ;;  %v60_v4 = vld [vmem:[#allocation6 + $0x58] sm:$0xff]  ;;  %s97_s1 = sshll.u32 %s197_s0, 4  ;;  %s98_s1 = int_to_ptr.vmem [resolvable:$true] %s97_s1 }
   0xd   :  { %v59_v5 = vld [vmem:[#allocation6 + $0x50] sm:$0xff]  ;;  %v58_v6 = vld [vmem:[#allocation6 + $0x48] sm:$0xff]  ;;  %v57_v7 = vld [vmem:[#allocation6 + $0x40] sm:$0xff] }
   0xe   :  { %v56_v8 = vld [vmem:[#allocation6 + $0x38] sm:$0xff]  ;;  %v55_v9 = vld [vmem:[#allocation6 + $0x30] sm:$0xff]  ;;  %v54_v10 = vld [vmem:[#allocation6 + $0x28] sm:$0xff] }
   0xf   :  { %v53_v11 = vld [vmem:[#allocation6 + $0x20] sm:$0xff]  ;;  %v52_v12 = vld [vmem:[#allocation6 + $0x18] sm:$0xff]  ;;  %v51_v13 = vld [vmem:[#allocation6 + $0x10] sm:$0xff] }
  0x10   :  { %66 = vmatpush.xpose.msra.mxu0 %v63_v1  ;;  %v50_v14 = vld [vmem:[#allocation6 + $0x8] sm:$0xff]  ;;  %v49_v15 = vld [vmem:[#allocation6] sm:$0xff]  ;;  %v48_v16 = vld [vmem:[#allocation3] sm:$0xff] }
  0x14   :  { %67 = vmatpush.xpose.msra.mxu0 %v62_v2 }
  0x18   :  { %68 = vmatpush.xpose.msra.mxu0 %v61_v3 }
  0x1c   :  { %69 = vmatpush.xpose.msra.mxu0 %v60_v4 }
  0x20   :  { %70 = vmatpush.xpose.msra.mxu0 %v59_v5 }
  0x24   :  { %71 = vmatpush.xpose.msra.mxu0 %v58_v6 }
  0x28   :  { %72 = vmatpush.xpose.msra.mxu0 %v57_v7 }
  0x2c   :  { %73 = vmatpush.xpose.msra.mxu0 %v56_v8 }
  0x30   :  { %74 = vmatpush.xpose.msra.mxu0 %v55_v9 }
  0x34   :  { %75 = vmatpush.xpose.msra.mxu0 %v54_v10 }
  0x38   :  { %76 = vmatpush.xpose.msra.mxu0 %v53_v11 }
  0x3c   :  { %77 = vmatpush.xpose.msra.mxu0 %v52_v12 }
  0x40   :  { %78 = vmatpush.xpose.msra.mxu0 %v51_v13 }
  0x44   :  { %79 = vmatpush.xpose.msra.mxu0 %v50_v14 }
  0x48   :  { %80 = vmatpush.xpose.msra.mxu0 %v49_v15 }
  0x4b   :  { %81 = vmatmul.f32.vlgmr.msra.gmra.mxu0 %v48_v16 }
  0xc8   :  { %v82_v17 = vpop.f32.mrf.mxu0 }
  0xc9   :  { %91 = vst [vmem:[#allocation8] sm:$0xff] %v82_v17 }
  0xca   :  { %102 = dma.vmem_to_hbm [thread:$0]  %s98_s1, 128, %s100_s23, [#allocation5]  }
  0xcb   :  { %191 = dma.done.wait [#allocation5], 128  }
  0xcc   :  { %192 = vsyncadd [#allocation5], 4294967168 }
  0xcd   :  { %107 = vsyncpa [#allocation4], 1 }
  0xce   :  { %108 = vsyncpa [#allocation7], 1 }
  0xcf   :  { %109 = vsyncpa [#allocation5], 1 }

</bundles_post_ra>
